<compile_context>
chip_gen: v5e
topology: v5e:2x2
jax: 0.10.0
libtpu: 0.0.40
codegen_flags: <defaults>
</compile_context>

<pallas_src>
import math

import jax
import jax.numpy as jnp
from jax.experimental import pallas as pl
from jax.experimental.pallas import tpu as pltpu

_BN_EPS = 1e-3  # ultralytics Conv uses BatchNorm2d(eps=1e-3)


# ----------------------------------------------------------------------------
# Fused Pallas kernel: pointwise conv (MXU) + SiLU + depthwise 3x3/s2 conv (VPU)
# ----------------------------------------------------------------------------
def _scdown_kernel(x_ref, w1_ref, b1_ref, w2_ref, b2_ref, o_ref, carry_ref):
    """One (batch, row-tile) step.  All intermediates stay in vregs / VMEM.

    x_ref    : (1, 2*tho, wo, 2*c1)  input rows [2*r0, 2*r0+2*tho), column pairs
                                     merged into the lane dim (free wrapper reshape)
    w1_ref   : (c1, c2)  bf16   cv1 1x1 weight, BN folded
    b1_ref   : (1, c2)   f32    cv1 folded BN bias
    w2_ref   : (9, c2)   f32    cv2 depthwise 3x3 weight (tap-major dy*3+dx), BN folded
    b2_ref   : (1, c2)   f32    cv2 folded BN bias
    o_ref    : (1, tho, wo, c2) bf16  output rows [r0, r0+tho)
    carry_ref: (2, wo, c2) f32  cv1 of the last (odd) input row of the PREVIOUS
                                row tile: [0]=even columns, [1]=odd columns.
                                Requires the row-tile grid axis to be sequential
                                ("arbitrary") within each image.
    """
    _, tho, wo, c2 = o_ref.shape
    c1 = x_ref.shape[3] // 2
    t = pl.program_id(1)

    # Image-top tile: the halo row above the image is zero padding (pad = 1).
    @pl.when(t == 0)
    def _zero_halo():
        carry_ref[...] = jnp.zeros_like(carry_ref)

    prev_even = carry_ref[0]          # cv1[2*r0-1, 2j]   (f32)
    prev_odd = carry_ref[1]           # cv1[2*r0-1, 2j+1]

    # ---- cv1: 1x1 conv + folded BN + SiLU, split by input-column parity ------
    xv = x_ref[0].astype(jnp.bfloat16)             # (2*tho, wo, 2*c1)
    w1 = w1_ref[...]
    b1 = b1_ref[...]

    def cv1(xp):                                   # xp: (2*tho, wo, c1) bf16
        y = jnp.dot(xp.reshape(2 * tho * wo, c1), w1,
                    preferred_element_type=jnp.float32) + b1
        y = y * jax.nn.sigmoid(y)                  # SiLU (logistic -> EUP)
        # (2*tho*wo, c2) -> (tho, 2, wo, c2): free row-major even/odd row split
        return y.reshape(tho, 2, wo, c2)

    y_e = cv1(xv[..., :c1])      # cv1 at even input columns 2j
    y_o = cv1(xv[..., c1:])      # cv1 at odd  input columns 2j+1

    p00 = y_e[:, 0]              # cv1[2i  , 2j  ]   (tho, wo, c2) f32
    p10 = y_e[:, 1]              # cv1[2i+1, 2j  ]
    p01 = y_o[:, 0]              # cv1[2i  , 2j+1]
    p11 = y_o[:, 1]              # cv1[2i+1, 2j+1]

    # ---- cv2: depthwise 3x3 / stride 2 / pad 1 + folded BN (no activation) ---
    def shift_cols(p):           # out[..., j, :] = p[..., j-1, :];  zero at j == 0
        zero = jnp.zeros_like(p[..., :1, :])
        return jnp.concatenate([zero, p[..., :-1, :]], axis=-2)

    def shift_rows(p, top):      # out[i] = p[i-1];  out[0] = top  (top: (wo, c2))
        if tho == 1:
            return top[None]
        return jnp.concatenate([top[None], p[:-1]], axis=0)

    r10 = shift_rows(p10, prev_even)   # cv1[2i-1, 2j  ]
    r11 = shift_rows(p11, prev_odd)    # cv1[2i-1, 2j+1]

    w2 = w2_ref[...]                   # (9, c2) -- loaded once, reused per tap
    acc = p00 * w2[4] + p01 * w2[5] + shift_cols(p01) * w2[3]
    acc = acc + p10 * w2[7] + p11 * w2[8] + shift_cols(p11) * w2[6]
    acc = acc + r10 * w2[1] + r11 * w2[2] + shift_cols(r11) * w2[0]

    o_ref[0] = (acc + b2_ref[...]).astype(o_ref.dtype)

    # Carry cv1 of this tile's last (odd) input row to the next row tile.
    carry_ref[0] = p10[tho - 1]
    carry_ref[1] = p11[tho - 1]


# ----------------------------------------------------------------------------
# Wrapper: free column-pair reshape + pallas_call
# ----------------------------------------------------------------------------
def scdown_forward(x_nhwc, params, *, row_tile=None):
    """x_nhwc: (N, H, W, c1). Returns (N, H//2, W//2, c2) in NHWC (bf16)."""
    # TODO(synk): generalise the in-kernel phase decomposition to arbitrary (k, s);
    # this kernel implements the standard SCDown config k=3, s=2.
    assert params["k"] == 3 and params["s"] == 2, "specialised for SCDown(k=3, s=2)"
    n, h, w, c1 = x_nhwc.shape
    assert h % 2 == 0 and w % 2 == 0
    ho, wo = h // 2, w // 2
    c2 = params["b1"].shape[-1]

    # Output-row tile: largest divisor of ho that is <= 16 (bounds per-step VMEM;
    # re-derive the cap for very large c2 on v7x's 64 MiB).
    if row_tile is None:
        row_tile = 1
        for d in range(min(ho, 16), 0, -1):
            if ho % d == 0:
                row_tile = d
                break
    assert ho % row_tile == 0 and row_tile >= 1
    nt = ho // row_tile
    hb = 2 * row_tile

    # FREE (bitcast) reshape: merge each adjacent input-column pair into the lane
    # dim.  No transpose, no dtype cast, no extra HBM pass over the input.
    x2 = x_nhwc.reshape(n, h, wo, 2 * c1)

    return pl.pallas_call(
        _scdown_kernel,
        out_shape=jax.ShapeDtypeStruct((n, ho, wo, c2), jnp.bfloat16),
        grid_spec=pltpu.PrefetchScalarGridSpec(
            num_scalar_prefetch=0,
            grid=(n, nt),
            in_specs=[
                pl.BlockSpec((1, hb, wo, 2 * c1), lambda b, t: (b, t, 0, 0)),
                pl.BlockSpec((c1, c2), lambda b, t: (0, 0)),
                pl.BlockSpec((1, c2), lambda b, t: (0, 0)),
                pl.BlockSpec((9, c2), lambda b, t: (0, 0)),
                pl.BlockSpec((1, c2), lambda b, t: (0, 0)),
            ],
            out_specs=pl.BlockSpec((1, row_tile, wo, c2), lambda b, t: (b, t, 0, 0)),
            scratch_shapes=[pltpu.VMEM((2, wo, c2), jnp.float32)],  # row-halo carry
        ),
        compiler_params=pltpu.CompilerParams(
            # batch: parallel (megacore); row tiles: sequential per image because
            # of the halo carry scratch.
            dimension_semantics=("parallel", "arbitrary")),
    )(x2, params["w1"], params["b1"], params["w2"], params["b2"])


# ----------------------------------------------------------------------------
# Deterministic synthetic parameters (Conv2d weight + eval-mode BN, folded)
# ----------------------------------------------------------------------------
def _fold_bn(key, cout):
    k1, k2, k3, k4 = jax.random.split(key, 4)
    gamma = jax.random.uniform(k1, (cout,), minval=0.5, maxval=1.5)
    beta = 0.1 * jax.random.normal(k2, (cout,))
    mean = 0.1 * jax.random.normal(k3, (cout,))
    var = jax.random.uniform(k4, (cout,), minval=0.5, maxval=1.5)
    scale = gamma / jnp.sqrt(var + _BN_EPS)
    return scale, beta - mean * scale


def init_scdown(key, c1, c2, k=3, s=2):
    kw1, kb1, kw2, kb2 = jax.random.split(key, 4)
    # cv1: Conv2d(c1, c2, 1, bias=False) + BN  ->  (c1, c2) weight + (1, c2) bias
    w1 = jax.random.normal(kw1, (c1, c2), jnp.float32) / math.sqrt(c1)
    s1, b1 = _fold_bn(kb1, c2)
    w1 = w1 * s1
    # cv2: depthwise Conv2d(c2, c2, k, s, pad=k//2, groups=c2, bias=False) + BN
    w2 = jax.random.normal(kw2, (k * k, c2), jnp.float32) / float(k)  # tap-major
    s2, b2 = _fold_bn(kb2, c2)
    w2 = w2 * s2
    return {"w1": w1.astype(jnp.bfloat16), "b1": b1.reshape(1, c2),
            "w2": w2, "b2": b2.reshape(1, c2), "k": k, "s": s}


# ----------------------------------------------------------------------------
# Pure-JAX reference (same bf16-cast inputs) for a correctness self-check
# ----------------------------------------------------------------------------
def scdown_ref(x_nhwc, params):
    xb = x_nhwc.astype(jnp.bfloat16).astype(jnp.float32)
    w1 = params["w1"].astype(jnp.float32)
    y1 = jnp.einsum("nhwc,cd->nhwd", xb, w1) + params["b1"][0]
    y1 = y1 * jax.nn.sigmoid(y1)
    n, h, w, c2 = y1.shape
    ho, wo = h // 2, w // 2
    y1p = jnp.pad(y1, ((0, 0), (1, 1), (1, 1), (0, 0)))
    acc = jnp.zeros((n, ho, wo, c2), jnp.float32)
    for dy in range(3):
        for dx in range(3):
            tap = y1p[:, dy:dy + h:2, dx:dx + w:2, :]
            acc = acc + tap * params["w2"][dy * 3 + dx]
    return acc + params["b2"][0]


# ----------------------------------------------------------------------------
if __name__ == "__main__":
    # SCDown(c1=64, c2=128, k=3, s=2); PyTorch input NCHW (2, 64, 16, 16) -> NHWC here.
    N, H, W, C1, C2 = 2, 16, 16, 64, 128
    key = jax.random.PRNGKey(0)
    kx, kp = jax.random.split(key)
    x_nhwc = jax.random.normal(kx, (N, H, W, C1), jnp.float32)
    params = init_scdown(kp, C1, C2, k=3, s=2)

    ref = scdown_ref(x_nhwc, params)

    # row_tile=2 exercises the multi-tile path (halo carry across row tiles);
    # row_tile=8 is the single-tile-per-image path.
    for rt in (2, 8):
        fwd = jax.jit(lambda x, rt=rt: scdown_forward(x, params, row_tile=rt))
        out = jax.block_until_ready(fwd(x_nhwc))
        assert out.shape == (N, H // 2, W // 2, C2), out.shape
        out_f32 = out.astype(jnp.float32)
        assert bool(jnp.all(jnp.isfinite(out_f32)))
        err = float(jnp.max(jnp.abs(out_f32 - ref) / (1.0 + jnp.abs(ref))))
        assert err < 2e-2, (rt, err)   # bf16 output rounding dominates the error
    print("KERNEL_OK")
</pallas_src>

<mosaic_0001>
module attributes {stable_mosaic.version = 11 : i64} {
  func.func @_scdown_kernel(%arg0: i32, %arg1: i32, %arg2: memref<1x4x8x128xf32, #tpu.memory_space<vmem>>, %arg3: memref<64x128xbf16, #tpu.memory_space<vmem>>, %arg4: memref<1x128xf32, #tpu.memory_space<vmem>>, %arg5: memref<9x128xf32, #tpu.memory_space<vmem>>, %arg6: memref<1x128xf32, #tpu.memory_space<vmem>>, %arg7: memref<1x2x8x128xbf16, #tpu.memory_space<vmem>>, %arg8: memref<2x8x128xf32, #tpu.memory_space<vmem>>) attributes {dimension_semantics = [#tpu.dimension_semantics<parallel>, #tpu.dimension_semantics<arbitrary>], iteration_bounds = array<i64: 2, 4>, scalar_prefetch = 0 : i64, scratch_operands = 1 : i64, tpu.core_type = #tpu.core_type<tc>, window_params = [{transform_indices = @transform_0, window_bounds = array<i64: 1, 4, 8, 128>}, {pipeline_mode = #tpu.pipeline_mode<synchronous>, transform_indices = @transform_1, window_bounds = array<i64: 64, 128>}, {pipeline_mode = #tpu.pipeline_mode<synchronous>, transform_indices = @transform_2, window_bounds = array<i64: 1, 128>}, {pipeline_mode = #tpu.pipeline_mode<synchronous>, transform_indices = @transform_3, window_bounds = array<i64: 9, 128>}, {pipeline_mode = #tpu.pipeline_mode<synchronous>, transform_indices = @transform_4, window_bounds = array<i64: 1, 128>}, {transform_indices = @transform_5, window_bounds = array<i64: 1, 2, 8, 128>}]} {
    %c0_i32 = arith.constant 0 : i32
    %0 = arith.cmpi eq, %arg1, %c0_i32 : i32
    %1 = arith.extui %0 : i1 to i32
    %c0_i32_0 = arith.constant 0 : i32
    %2 = arith.cmpi ne, %1, %c0_i32_0 : i32
    scf.if %2 {
      %cst_33 = arith.constant 0.000000e+00 : f32
      %131 = vector.broadcast %cst_33 : f32 to vector<2x8x128xf32>
      %c0_34 = arith.constant 0 : index
      %c0_35 = arith.constant 0 : index
      %c0_36 = arith.constant 0 : index
      %132 = vector.load %arg8[%c0_34, %c0_35, %c0_36] : memref<2x8x128xf32, #tpu.memory_space<vmem>>, vector<2x8x128xf32>
      tpu.vector_store %arg8[%c0_34, %c0_35, %c0_36], %131 {strides = array<i32>} : memref<2x8x128xf32, #tpu.memory_space<vmem>>, vector<2x8x128xf32>,
    } else {
    }
    %c0 = arith.constant 0 : index
    %c0_1 = arith.constant 0 : index
    %c0_2 = arith.constant 0 : index
    %3 = vector.load %arg8[%c0, %c0_1, %c0_2] : memref<2x8x128xf32, #tpu.memory_space<vmem>>, vector<1x8x128xf32>
    %4 = vector.shape_cast %3 : vector<1x8x128xf32> to vector<8x128xf32>
    %c1 = arith.constant 1 : index
    %c0_3 = arith.constant 0 : index
    %c0_4 = arith.constant 0 : index
    %5 = vector.load %arg8[%c1, %c0_3, %c0_4] : memref<2x8x128xf32, #tpu.memory_space<vmem>>, vector<1x8x128xf32>
    %6 = vector.shape_cast %5 : vector<1x8x128xf32> to vector<8x128xf32>
    %c0_5 = arith.constant 0 : index
    %c0_6 = arith.constant 0 : index
    %c0_7 = arith.constant 0 : index
    %c0_8 = arith.constant 0 : index
    %7 = vector.load %arg2[%c0_5, %c0_6, %c0_7, %c0_8] : memref<1x4x8x128xf32, #tpu.memory_space<vmem>>, vector<1x4x8x128xf32>
    %8 = vector.shape_cast %7 : vector<1x4x8x128xf32> to vector<4x8x128xf32>
    %9 = arith.truncf %8 : vector<4x8x128xf32> to vector<4x8x128xbf16>
    %c0_9 = arith.constant 0 : index
    %c0_10 = arith.constant 0 : index
    %10 = vector.load %arg3[%c0_9, %c0_10] : memref<64x128xbf16, #tpu.memory_space<vmem>>, vector<64x128xbf16>
    %c0_11 = arith.constant 0 : index
    %c0_12 = arith.constant 0 : index
    %11 = vector.load %arg4[%c0_11, %c0_12] : memref<1x128xf32, #tpu.memory_space<vmem>>, vector<1x128xf32>
    %12 = vector.extract_strided_slice %9 {offsets = [0, 0, 0], sizes = [4, 8, 64], strides = [1, 1, 1]} : vector<4x8x128xbf16> to vector<4x8x64xbf16>
    %13 = vector.shape_cast %12 : vector<4x8x64xbf16> to vector<32x64xbf16>
    %cst = arith.constant dense<0.000000e+00> : vector<32x128xf32>
    %14 = tpu.matmul %13, %10, %cst {dimension_numbers = #tpu.dot_dimension_numbers<[1], [0], [0], [1], [0, 0, 1, 1], [], []>} : vector<32x64xbf16>, vector<64x128xbf16>, vector<32x128xf32> -> vector<32x128xf32>
    %15 = vector.broadcast %11 : vector<1x128xf32> to vector<32x128xf32>
    %16 = arith.addf %14, %15 : vector<32x128xf32>
    %17 = arith.negf %16 : vector<32x128xf32>
    %18 = math.exp %17 : vector<32x128xf32>
    %cst_13 = arith.constant 1.000000e+00 : f32
    %19 = vector.broadcast %cst_13 : f32 to vector<32x128xf32>
    %20 = arith.addf %19, %18 : vector<32x128xf32>
    %21 = arith.divf %19, %20 : vector<32x128xf32>
    %22 = arith.mulf %16, %21 : vector<32x128xf32>
    %23 = vector.shape_cast %22 : vector<32x128xf32> to vector<2x2x8x128xf32>
    %24 = vector.extract_strided_slice %9 {offsets = [0, 0, 64], sizes = [4, 8, 64], strides = [1, 1, 1]} : vector<4x8x128xbf16> to vector<4x8x64xbf16>
    %25 = vector.shape_cast %24 : vector<4x8x64xbf16> to vector<32x64xbf16>
    %cst_14 = arith.constant dense<0.000000e+00> : vector<32x128xf32>
    %26 = tpu.matmul %25, %10, %cst_14 {dimension_numbers = #tpu.dot_dimension_numbers<[1], [0], [0], [1], [0, 0, 1, 1], [], []>} : vector<32x64xbf16>, vector<64x128xbf16>, vector<32x128xf32> -> vector<32x128xf32>
    %27 = vector.broadcast %11 : vector<1x128xf32> to vector<32x128xf32>
    %28 = arith.addf %26, %27 : vector<32x128xf32>
    %29 = arith.negf %28 : vector<32x128xf32>
    %30 = math.exp %29 : vector<32x128xf32>
    %cst_15 = arith.constant 1.000000e+00 : f32
    %31 = vector.broadcast %cst_15 : f32 to vector<32x128xf32>
    %32 = arith.addf %31, %30 : vector<32x128xf32>
    %33 = arith.divf %31, %32 : vector<32x128xf32>
    %34 = arith.mulf %28, %33 : vector<32x128xf32>
    %35 = vector.shape_cast %34 : vector<32x128xf32> to vector<2x2x8x128xf32>
    %36 = vector.extract_strided_slice %23 {offsets = [0, 0, 0, 0], sizes = [2, 1, 8, 128], strides = [1, 1, 1, 1]} : vector<2x2x8x128xf32> to vector<2x1x8x128xf32>
    %37 = vector.shape_cast %36 : vector<2x1x8x128xf32> to vector<2x8x128xf32>
    %38 = vector.extract_strided_slice %23 {offsets = [0, 1, 0, 0], sizes = [2, 1, 8, 128], strides = [1, 1, 1, 1]} : vector<2x2x8x128xf32> to vector<2x1x8x128xf32>
    %39 = vector.shape_cast %38 : vector<2x1x8x128xf32> to vector<2x8x128xf32>
    %40 = vector.extract_strided_slice %35 {offsets = [0, 0, 0, 0], sizes = [2, 1, 8, 128], strides = [1, 1, 1, 1]} : vector<2x2x8x128xf32> to vector<2x1x8x128xf32>
    %41 = vector.shape_cast %40 : vector<2x1x8x128xf32> to vector<2x8x128xf32>
    %42 = vector.extract_strided_slice %35 {offsets = [0, 1, 0, 0], sizes = [2, 1, 8, 128], strides = [1, 1, 1, 1]} : vector<2x2x8x128xf32> to vector<2x1x8x128xf32>
    %43 = vector.shape_cast %42 : vector<2x1x8x128xf32> to vector<2x8x128xf32>
    %44 = vector.shape_cast %4 : vector<8x128xf32> to vector<1x8x128xf32>
    %45 = vector.extract_strided_slice %39 {offsets = [0, 0, 0], sizes = [1, 8, 128], strides = [1, 1, 1]} : vector<2x8x128xf32> to vector<1x8x128xf32>
    %46 = tpu.concatenate %44, %45 in 0 : vector<1x8x128xf32>, vector<1x8x128xf32> -> vector<2x8x128xf32>
    %47 = vector.shape_cast %6 : vector<8x128xf32> to vector<1x8x128xf32>
    %48 = vector.extract_strided_slice %43 {offsets = [0, 0, 0], sizes = [1, 8, 128], strides = [1, 1, 1]} : vector<2x8x128xf32> to vector<1x8x128xf32>
    %49 = tpu.concatenate %47, %48 in 0 : vector<1x8x128xf32>, vector<1x8x128xf32> -> vector<2x8x128xf32>
    %c0_16 = arith.constant 0 : index
    %c0_17 = arith.constant 0 : index
    %50 = vector.load %arg5[%c0_16, %c0_17] : memref<9x128xf32, #tpu.memory_space<vmem>>, vector<9x128xf32>
    %51 = vector.extract_strided_slice %50 {offsets = [4, 0], sizes = [1, 128], strides = [1, 1]} : vector<9x128xf32> to vector<1x128xf32>
    %52 = vector.shape_cast %51 : vector<1x128xf32> to vector<128xf32>
    %53 = vector.shape_cast %52 : vector<128xf32> to vector<1x1x128xf32>
    %54 = vector.broadcast %53 : vector<1x1x128xf32> to vector<2x8x128xf32>
    %55 = arith.mulf %37, %54 : vector<2x8x128xf32>
    %56 = vector.extract_strided_slice %50 {offsets = [5, 0], sizes = [1, 128], strides = [1, 1]} : vector<9x128xf32> to vector<1x128xf32>
    %57 = vector.shape_cast %56 : vector<1x128xf32> to vector<128xf32>
    %58 = vector.shape_cast %57 : vector<128xf32> to vector<1x1x128xf32>
    %59 = vector.broadcast %58 : vector<1x1x128xf32> to vector<2x8x128xf32>
    %60 = arith.mulf %41, %59 : vector<2x8x128xf32>
    %61 = arith.addf %55, %60 : vector<2x8x128xf32>
    %cst_18 = arith.constant 0.000000e+00 : f32
    %62 = vector.broadcast %cst_18 : f32 to vector<2x1x128xf32>
    %63 = vector.extract_strided_slice %41 {offsets = [0, 0, 0], sizes = [2, 7, 128], strides = [1, 1, 1]} : vector<2x8x128xf32> to vector<2x7x128xf32>
    %64 = tpu.concatenate %62, %63 in 1 : vector<2x1x128xf32>, vector<2x7x128xf32> -> vector<2x8x128xf32>
    %65 = vector.extract_strided_slice %50 {offsets = [3, 0], sizes = [1, 128], strides = [1, 1]} : vector<9x128xf32> to vector<1x128xf32>
    %66 = vector.shape_cast %65 : vector<1x128xf32> to vector<128xf32>
    %67 = vector.shape_cast %66 : vector<128xf32> to vector<1x1x128xf32>
    %68 = vector.broadcast %67 : vector<1x1x128xf32> to vector<2x8x128xf32>
    %69 = arith.mulf %64, %68 : vector<2x8x128xf32>
    %70 = arith.addf %61, %69 : vector<2x8x128xf32>
    %71 = vector.extract_strided_slice %50 {offsets = [7, 0], sizes = [1, 128], strides = [1, 1]} : vector<9x128xf32> to vector<1x128xf32>
    %72 = vector.shape_cast %71 : vector<1x128xf32> to vector<128xf32>
    %73 = vector.shape_cast %72 : vector<128xf32> to vector<1x1x128xf32>
    %74 = vector.broadcast %73 : vector<1x1x128xf32> to vector<2x8x128xf32>
    %75 = arith.mulf %39, %74 : vector<2x8x128xf32>
    %76 = arith.addf %70, %75 : vector<2x8x128xf32>
    %77 = vector.extract_strided_slice %50 {offsets = [8, 0], sizes = [1, 128], strides = [1, 1]} : vector<9x128xf32> to vector<1x128xf32>
    %78 = vector.shape_cast %77 : vector<1x128xf32> to vector<128xf32>
    %79 = vector.shape_cast %78 : vector<128xf32> to vector<1x1x128xf32>
    %80 = vector.broadcast %79 : vector<1x1x128xf32> to vector<2x8x128xf32>
    %81 = arith.mulf %43, %80 : vector<2x8x128xf32>
    %82 = arith.addf %76, %81 : vector<2x8x128xf32>
    %cst_19 = arith.constant 0.000000e+00 : f32
    %83 = vector.broadcast %cst_19 : f32 to vector<2x1x128xf32>
    %84 = vector.extract_strided_slice %43 {offsets = [0, 0, 0], sizes = [2, 7, 128], strides = [1, 1, 1]} : vector<2x8x128xf32> to vector<2x7x128xf32>
    %85 = tpu.concatenate %83, %84 in 1 : vector<2x1x128xf32>, vector<2x7x128xf32> -> vector<2x8x128xf32>
    %86 = vector.extract_strided_slice %50 {offsets = [6, 0], sizes = [1, 128], strides = [1, 1]} : vector<9x128xf32> to vector<1x128xf32>
    %87 = vector.shape_cast %86 : vector<1x128xf32> to vector<128xf32>
    %88 = vector.shape_cast %87 : vector<128xf32> to vector<1x1x128xf32>
    %89 = vector.broadcast %88 : vector<1x1x128xf32> to vector<2x8x128xf32>
    %90 = arith.mulf %85, %89 : vector<2x8x128xf32>
    %91 = arith.addf %82, %90 : vector<2x8x128xf32>
    %92 = vector.extract_strided_slice %50 {offsets = [1, 0], sizes = [1, 128], strides = [1, 1]} : vector<9x128xf32> to vector<1x128xf32>
    %93 = vector.shape_cast %92 : vector<1x128xf32> to vector<128xf32>
    %94 = vector.shape_cast %93 : vector<128xf32> to vector<1x1x128xf32>
    %95 = vector.broadcast %94 : vector<1x1x128xf32> to vector<2x8x128xf32>
    %96 = arith.mulf %46, %95 : vector<2x8x128xf32>
    %97 = arith.addf %91, %96 : vector<2x8x128xf32>
    %98 = vector.extract_strided_slice %50 {offsets = [2, 0], sizes = [1, 128], strides = [1, 1]} : vector<9x128xf32> to vector<1x128xf32>
    %99 = vector.shape_cast %98 : vector<1x128xf32> to vector<128xf32>
    %100 = vector.shape_cast %99 : vector<128xf32> to vector<1x1x128xf32>
    %101 = vector.broadcast %100 : vector<1x1x128xf32> to vector<2x8x128xf32>
    %102 = arith.mulf %49, %101 : vector<2x8x128xf32>
    %103 = arith.addf %97, %102 : vector<2x8x128xf32>
    %cst_20 = arith.constant 0.000000e+00 : f32
    %104 = vector.broadcast %cst_20 : f32 to vector<2x1x128xf32>
    %105 = vector.extract_strided_slice %49 {offsets = [0, 0, 0], sizes = [2, 7, 128], strides = [1, 1, 1]} : vector<2x8x128xf32> to vector<2x7x128xf32>
    %106 = tpu.concatenate %104, %105 in 1 : vector<2x1x128xf32>, vector<2x7x128xf32> -> vector<2x8x128xf32>
    %107 = vector.extract_strided_slice %50 {offsets = [0, 0], sizes = [1, 128], strides = [1, 1]} : vector<9x128xf32> to vector<1x128xf32>
    %108 = vector.shape_cast %107 : vector<1x128xf32> to vector<128xf32>
    %109 = vector.shape_cast %108 : vector<128xf32> to vector<1x1x128xf32>
    %110 = vector.broadcast %109 : vector<1x1x128xf32> to vector<2x8x128xf32>
    %111 = arith.mulf %106, %110 : vector<2x8x128xf32>
    %112 = arith.addf %103, %111 : vector<2x8x128xf32>
    %c0_21 = arith.constant 0 : index
    %c0_22 = arith.constant 0 : index
    %113 = vector.load %arg6[%c0_21, %c0_22] : memref<1x128xf32, #tpu.memory_space<vmem>>, vector<1x128xf32>
    %114 = vector.shape_cast %113 : vector<1x128xf32> to vector<1x1x128xf32>
    %115 = vector.broadcast %114 : vector<1x1x128xf32> to vector<2x8x128xf32>
    %116 = arith.addf %112, %115 : vector<2x8x128xf32>
    %117 = arith.truncf %116 : vector<2x8x128xf32> to vector<2x8x128xbf16>
    %c0_23 = arith.constant 0 : index
    %c0_24 = arith.constant 0 : index
    %c0_25 = arith.constant 0 : index
    %c0_26 = arith.constant 0 : index
    %118 = vector.load %arg7[%c0_23, %c0_24, %c0_25, %c0_26] : memref<1x2x8x128xbf16, #tpu.memory_space<vmem>>, vector<1x2x8x128xbf16>
    %119 = vector.shape_cast %118 : vector<1x2x8x128xbf16> to vector<2x8x128xbf16>
    %120 = vector.shape_cast %117 : vector<2x8x128xbf16> to vector<1x2x8x128xbf16>
    tpu.vector_store %arg7[%c0_23, %c0_24, %c0_25, %c0_26], %120 {strides = array<i32>} : memref<1x2x8x128xbf16, #tpu.memory_space<vmem>>, vector<1x2x8x128xbf16>,
    %121 = vector.extract_strided_slice %39 {offsets = [1, 0, 0], sizes = [1, 8, 128], strides = [1, 1, 1]} : vector<2x8x128xf32> to vector<1x8x128xf32>
    %122 = vector.shape_cast %121 : vector<1x8x128xf32> to vector<8x128xf32>
    %c0_27 = arith.constant 0 : index
    %c0_28 = arith.constant 0 : index
    %c0_29 = arith.constant 0 : index
    %123 = vector.load %arg8[%c0_27, %c0_28, %c0_29] : memref<2x8x128xf32, #tpu.memory_space<vmem>>, vector<1x8x128xf32>
    %124 = vector.shape_cast %123 : vector<1x8x128xf32> to vector<8x128xf32>
    %125 = vector.shape_cast %122 : vector<8x128xf32> to vector<1x8x128xf32>
    tpu.vector_store %arg8[%c0_27, %c0_28, %c0_29], %125 {strides = array<i32>} : memref<2x8x128xf32, #tpu.memory_space<vmem>>, vector<1x8x128xf32>,
    %126 = vector.extract_strided_slice %43 {offsets = [1, 0, 0], sizes = [1, 8, 128], strides = [1, 1, 1]} : vector<2x8x128xf32> to vector<1x8x128xf32>
    %127 = vector.shape_cast %126 : vector<1x8x128xf32> to vector<8x128xf32>
    %c1_30 = arith.constant 1 : index
    %c0_31 = arith.constant 0 : index
    %c0_32 = arith.constant 0 : index
    %128 = vector.load %arg8[%c1_30, %c0_31, %c0_32] : memref<2x8x128xf32, #tpu.memory_space<vmem>>, vector<1x8x128xf32>
    %129 = vector.shape_cast %128 : vector<1x8x128xf32> to vector<8x128xf32>
    %130 = vector.shape_cast %127 : vector<8x128xf32> to vector<1x8x128xf32>
    tpu.vector_store %arg8[%c1_30, %c0_31, %c0_32], %130 {strides = array<i32>} : memref<2x8x128xf32, #tpu.memory_space<vmem>>, vector<1x8x128xf32>,
    return
  }
  func.func @transform_0(%arg0: i32, %arg1: i32) -> (i32, i32, i32, i32) {
    %c0_i32 = arith.constant 0 : i32
    %c0_i32_0 = arith.constant 0 : i32
    %c0_i32_1 = arith.constant 0 : i32
    return %arg0, %arg1, %c0_i32, %c0_i32_0 : i32, i32, i32, i32
  }
  func.func @transform_1(%arg0: i32, %arg1: i32) -> (i32, i32) {
    %c0_i32 = arith.constant 0 : i32
    %c0_i32_0 = arith.constant 0 : i32
    %c0_i32_1 = arith.constant 0 : i32
    return %c0_i32, %c0_i32_0 : i32, i32
  }
  func.func @transform_2(%arg0: i32, %arg1: i32) -> (i32, i32) {
    %c0_i32 = arith.constant 0 : i32
    %c0_i32_0 = arith.constant 0 : i32
    %c0_i32_1 = arith.constant 0 : i32
    return %c0_i32, %c0_i32_0 : i32, i32
  }
  func.func @transform_3(%arg0: i32, %arg1: i32) -> (i32, i32) {
    %c0_i32 = arith.constant 0 : i32
    %c0_i32_0 = arith.constant 0 : i32
    %c0_i32_1 = arith.constant 0 : i32
    return %c0_i32, %c0_i32_0 : i32, i32
  }
  func.func @transform_4(%arg0: i32, %arg1: i32) -> (i32, i32) {
    %c0_i32 = arith.constant 0 : i32
    %c0_i32_0 = arith.constant 0 : i32
    %c0_i32_1 = arith.constant 0 : i32
    return %c0_i32, %c0_i32_0 : i32, i32
  }
  func.func @transform_5(%arg0: i32, %arg1: i32) -> (i32, i32, i32, i32) {
    %c0_i32 = arith.constant 0 : i32
    %c0_i32_0 = arith.constant 0 : i32
    %c0_i32_1 = arith.constant 0 : i32
    return %arg0, %arg1, %c0_i32, %c0_i32_0 : i32, i32, i32, i32
  }
}

</mosaic_0001>

<bundles_post_ra>
// kernel: _lambda_.1
= control target key start
LH: loop header
LB: loop body
LE: loop exit
PB: predicated region body
PF: predicated region fallthrough
CT: control target
= control target key end

     0   :  { %10 = vsyncpa [#allocation4], 0  ;;  %s1306_s0 = inlined_call_operand.vmem [shape: f32[2,16,8,128], index: 0, kind: input, shape index: {}]   ;;  %s1307_s1 = inlined_call_operand.vmem [shape: bf16[64,128], index: 1, kind: input, shape index: {}]   ;;  %s1308_s2 = inlined_call_operand.vmem [shape: f32[1,128], index: 2, kind: input, shape index: {}]   ;;  %s1309_s3 = inlined_call_operand.vmem [shape: f32[9,128], index: 3, kind: input, shape index: {}]   ;;  %s1310_s4 = inlined_call_operand.vmem [shape: f32[1,128], index: 4, kind: input, shape index: {}]   ;;  %s1311_s5 = inlined_call_operand.hbm [shape: bf16[2,8,8,128], index: 5, kind: output, shape index: {}]  }
   0x1   :  { %12 = vsyncpa [#allocation4 + $0x1], 0  ;;  %s1010_s18 = smov 0   ;;  %s1012_s19 = smov 0  }
   0x2   :  { %s1014_s20 = smov 0   ;;  %s1016_s21 = smov 0  }
   0x3   :  { %s1018_s22 = smov 0   ;;  %s1020_s23 = smov 0  }
   0x4   :  { %s1022_s24 = smov 0   ;;  %s1024_s25 = smov 0  }
   0x5 LB: > { %s711_s26 = sadd.s32 4294967295, %s975_s25   ;;  %s712_s27 = sadd.s32 4294967294, %s975_s25   ;;  %s975_s25 = sphi %s1024_s25, %s18_s25   ;;  %s971_s24 = sphi %s1022_s24, %s1328_s24   ;;  %s967_s23 = sphi %s1020_s23, %s1327_s23   ;;  %s963_s22 = sphi %s1018_s22, %s1326_s22   ;;  %s959_s21 = sphi %s1016_s21, %s1325_s21   ;;  %s955_s20 = sphi %s1014_s20, %s1324_s20   ;;  %s951_s19 = sphi %s1012_s19, %s1323_s19   ;;  %s947_s18 = sphi %s1010_s18, %s1322_s18  }
   0x6   : > { %s27_s28 = sadd.s32 1, %s967_s23  ;;  %s30_s29 = sadd.s32 1, %s971_s24 }
   0x7   : > { %p28_p0 = scmp.ge.s32.totalorder %s27_s28, 4  ;;  %p161_p1 = scmp.ne.s32.totalorder %s955_s20, %s951_s19 }
   0x8   : > { %p162_p2 = scmp.eq.s32.totalorder %s711_s26, 7  ;;  %p167_p5 = scmp.ne.s32.totalorder %s951_s19, %s947_s18 }
   0x9   : > { %s1330_s28 = smov (%p28_p0, %s27_s28), 0  ;;  %s1332_s29 = smov (!%p28_p0, %s30_s29), %s971_s24 }
   0xa   : > { %s147_s30 = ssub.s32 %s967_s23, %s1330_s28  ;;  %p1061_p3 = por %p162_p2, %p161_p1 }
   0xb   : > { %p32_p4 = scmp.ge.s32.totalorder %s1332_s29, 2  ;;  %p168_p6 = scmp.eq.s32.totalorder %s712_s27, 7 }
   0xc   : > { %p715_p7 = scmp.ge.s32.totalorder %s975_s25, 1  ;;  %p211_p9 = scmp.lt.s32.totalorder %s975_s25, 9 }
   0xd   : > { %s1334_s29 = smov (%p32_p4, %s1332_s29), 0  ;;  %p1070_p8 = por %p168_p6, %p167_p5 }
   0xe   : > { %s146_s8 = ssub.s32 %s971_s24, %s1334_s29  ;;  %s151_s9 = sadd.s32 1, %s955_s20 }
   0xf   : > { %s148_s10 = sor.u32 %s147_s30, %s146_s8  ;;  %p212_p10 = pnand %p715_p7, %p211_p9 }
  0x10   : > { %p149_p11 = scmp.eq.s32.totalorder %s148_s10, 0  ;;  %s240_s12 = sand.u32 (!%p212_p10), 1, %s951_s19  }
  0x11   : > { %215 = sbr.rel (%p212_p10) target bundleno = 349 (0x15d), region = 40  ;;  %s717_s13 = sshll.u32 (!%p212_p10), %s959_s21, 2 }
  0x12   : > { %s1079_s11 = scalar_select %p149_p11, %s955_s20, %s151_s9  }
  0x13   : > { %s1085_s14 = sshll.u32 (!%p212_p10), %s240_s12, 3  ;;  %p244_p12 = scmp.lt.s32.totalorder (!%p212_p10), %s963_s22, 1 }
  0x14   : > { %p246_p13 = scmp.lt.s32.totalorder (!%p212_p10), %s717_s13, 15  ;;  %s242_s9 = scalar_lea.vmem (!%p212_p10), [#allocation3], %s1085_s14 }
  0x15   : > { %p720_p0 = scmp.ne.s32.totalorder (!%p212_p10), %s959_s21, 0 }
  0x16   : > { %s245_s15 = scalar_select %p244_p12, %s963_s22, 1 }
  0x17   : > { %s1336_s13 = smov (!%p246_p13, %s717_s13), 15  ;;  %258 = sbr.rel (%p720_p0) target bundleno = 31 (0x1f), region = 44 }
  0x18   : > { %s718_s16 = sshll.u32 %s245_s15, 4 }
  0x19   : > { %s249_s17 = sadd.s32 %s718_s16, %s1336_s13 }
  0x1a   : > { %s719_s26 = sshll.u32 %s249_s17, 3 }
  0x1b   : > { %s251_s8 = scalar_lea.vmem %s1306_s0, %s719_s26 }
  0x1c   : > { %v977_v0 = vmov 0.0  }
  0x1d   : > { %259 = vst [vmem:[#allocation2] sm:$0xff] %v977_v0 }
  0x1e   : > { %260 = vst [vmem:[#allocation2 + $0x8] sm:$0xff] %v977_v0 }
  0x1f PF: > { %v266_v1 = vld [vmem:[%s251_s8 + $0x10] sm:$0xff]  ;;  %v267_v2 = vld [vmem:[%s251_s8 + $0x18] sm:$0xff]  ;;  %v264_v3 = vld [vmem:[%s251_s8] sm:$0xff]  ;;  %s978_s17 = smov 64   ;;  %vm318_vm0 = vcmask 523264   ;;  %s750_s30 = sshll.u32 %s959_s21, 1 }
  0x20   : > { %v270_v4 = vpack.c.bf16 %v266_v1, %v266_v1  ;;  %v271_v5 = vpack.c.bf16 %v267_v2, %v267_v2  ;;  %v265_v6 = vld [vmem:[%s251_s8 + $0x8] sm:$0xff]  ;;  %v758_v7 = vld [vmem:[%s1307_s1 + $0x18] sm:$0xff]  ;;  %v268_v10 = vpack.c.bf16 %v264_v3, %v264_v3  ;;  %v757_v12 = vld [vmem:[%s1307_s1 + $0x10] sm:$0xff]  ;;  %s751_s8 = sshll.u32 %s963_s22, 3  ;;  %s626_s27 = sshll.u32 %s242_s9, 4  ;;  %s627_s27 = int_to_ptr.vmem [resolvable:$true] %s626_s27 }
  0x21   : > { %v269_v11 = vpack.c.bf16 %v265_v6, %v265_v6  ;;  %764 = vmatpush.bf16.msra.mxu2 %v758_v7  ;;  %329 = vmatpush.bf16.msra.mxu0 %v758_v7  ;;  %v756_v16 = vld [vmem:[%s1307_s1 + $0x8] sm:$0xff]  ;;  %v755_v18 = vld [vmem:[%s1307_s1] sm:$0xff]  ;;  %s623_s10 = sadd.s32 %s751_s8, %s750_s30  ;;  %s612_s8 = scalar_lea.sflag [#allocation4], %s240_s12 }
  0x22   : > { %v290_v8 = vunpack.c.l.b16 %v270_v4  ;;  %v291_v9 = vunpack.c.l.b16 %v271_v5  ;;  %768 = vmatpush.bf16.msra.mxu3 %v758_v7  ;;  %438 = vmatpush.bf16.msra.mxu1 %v758_v7  ;;  %v288_v14 = vunpack.c.l.b16 %v268_v10  ;;  %v1111_v22 = vld [vmem:[%s1308_s2] ss:$0 sm:$0xff]  ;;  %s752_s21 = sshll.u32 %s623_s10, 2  ;;  %s901_s15 = scalar_lea.hbm %s1311_s5, 64 }
  0x23   : > { %v289_v15 = vunpack.c.l.b16 %v269_v11  ;;  %s625_s26 = scalar_lea.hbm %s1311_s5, %s752_s21 }
  0x24   : > { %v293_v13 = vpack.c.b16 %v291_v9, %v290_v8  ;;  %v1114_v37 = vld [vmem:[#allocation2] sm:$0xff]  ;;  %s628_s30 = sshll.u32 %s625_s26, 4  ;;  %s629_s30 = int_to_ptr.hbm [resolvable:$true] %s628_s30 }
  0x25   : > { %765 = vmatpush.bf16.msra.mxu2 %v757_v12  ;;  %330 = vmatpush.bf16.msra.mxu0 %v757_v12  ;;  %v292_v17 = vpack.c.b16 %v289_v15, %v288_v14  ;;  %s895_s10 = sshra.s32 %s629_s30, 4  ;;  %s896_s10 = int_to_ptr.hbm [resolvable:$true] %s895_s10 }
  0x26   : > { %426 = vrot.lane.b32.xlu0 %v293_v13, %s978_s17  ;;  %769 = vmatpush.bf16.msra.mxu3 %v757_v12  ;;  %s897_s22 = scalar_lea.hbm %s896_s10, 8  ;;  %p902_p5 = scmp.lt.s32.totalorder %s896_s10, %s1311_s5 }
  0x27   : > { %439 = vmatpush.bf16.msra.mxu1 %v757_v12  ;;  %p898_p1 = scmp.ne.s32.totalorder %s896_s10, %s897_s22  ;;  %p903_p6 = scmp.lt.s32.totalorder %s901_s15, %s897_s22 }
  0x29   : > { %766 = vmatpush.bf16.msra.mxu2 %v756_v16  ;;  %331 = vmatpush.bf16.msra.mxu0 %v756_v16  ;;  %p899_p2 = pnand %p898_p1, %p1061_p3  ;;  %p904_p7 = por %p903_p6, %p902_p5 }
  0x2a   : > { %770 = vmatpush.bf16.msra.mxu3 %v756_v16 }
  0x2b   : > { %440 = vmatpush.bf16.msra.mxu1 %v756_v16  ;;  %p900_p4 = pneg %p899_p2 }
  0x2d   : > { %767 = vmatpush.bf16.msra.mxu2 %v755_v18  ;;  %332 = vmatpush.bf16.msra.mxu0 %v755_v18  ;;  %p905_p9 = pnand %p904_p7, %p900_p4 }
  0x2e   : > { %424 = vrot.lane.b32.xlu0 %v292_v17, %s978_s17  ;;  %771 = vmatpush.bf16.msra.mxu3 %v755_v18 }
  0x2f   : > { %441 = vmatpush.bf16.msra.mxu1 %v755_v18 }
  0x30   : > { %738 = vmatmul.msk.bf16.vlgmr.msra.gmra.mxu2 %vm318_vm0, %v293_v13  ;;  %737 = vmatmul.msk.bf16.vlgmr.msra.gmra.mxu0 %vm318_vm0, %v292_v17 }
  0x98   : > { %v427_v19 = vpop.permute.xlu0 %426 }
  0x99   : > { %744 = vmatmul.msk.bf16.vlgmr.msra.gmra.mxu3 %vm318_vm0, %v427_v19 }
  0xa0   : > { %v425_v20 = vpop.permute.xlu0 %424 }
  0xa1   : > { %743 = vmatmul.msk.bf16.vlgmr.msra.gmra.mxu1 %vm318_vm0, %v425_v20 }
  0xad   : > { %v334_v40 = vpop.f32.mrf.mxu0 }
  0xae   : > { %v1120_v41 = vadd.f32 %v1111_v22, %v334_v40  ;;  %v1198_v40 = vld [vmem:[%s1309_s3] sm:$0xff] }
  0xb0   : > { %v739_v45 = vmul.f32 -1.442695, %v1120_v41 }
  0xb3   : > { %v339_v21 = vpop.f32.mrf.mxu2 }
  0xb4   : > { %v1123_v43 = vadd.f32 %v1111_v22, %v339_v21 }
  0xb5   : > { %v336_v42 = vpop.f32.mrf.mxu0 }
  0xb6   : > { %v1126_v44 = vadd.f32 %v1111_v22, %v336_v42  ;;  %v741_v46 = vmul.f32 -1.442695, %v1123_v43 }
  0xb8   : > { %v740_v47 = vmul.f32 -1.442695, %v1126_v44 }
  0xbb   : > { %v341_v23 = vpop.f32.mrf.mxu2 }
  0xbc   : > { %v342_v24 = vadd.f32 %v1111_v22, %v341_v23 }
  0xbe   : > { %v742_v25 = vmul.f32 -1.442695, %v342_v24 }
  0xc0   : > { %849 = vpow2.f32 %v742_v25 }
  0xc6   : > { %v850_v26 = vpop.eup %849 }
  0xc7   : > { %v359_v27 = vadd.f32 1.0, %v850_v26 }
  0xc9   : > { %851 = vrcp.f32 %v359_v27  ;;  %v416_v30 = vand.u32 2147483648, %v359_v27  ;;  %vm410_vm1 = vweird.f32 %v359_v27  ;;  %v414_v32 = vand.u32 2147483647, %v359_v27 }
  0xca   : > { %853 = vpow2.f32 %v739_v45 }
  0xcb   : > { %v417_v34 = vor.u32 1.1754944e-38, %v416_v30  ;;  %vm415_vm4 = vcmp.eq.f32.partialorder %v414_v32, 8.507059e+37  ;;  %855 = vpow2.f32 %v741_v46 }
  0xcc   : > { %857 = vpow2.f32 %v740_v47 }
  0xcf   : > { %v852_v28 = vpop.eup %851 }
  0xd0   : > { %v406_v29 = vmul.f32 %v852_v28, %v359_v27  ;;  %vm411_vm2 = vweird.f32 %v852_v28  ;;  %v854_v48 = vpop.eup %853 }
  0xd1   : > { %vm412_vm3 = vmor %vm410_vm1, %vm411_vm2  ;;  %v856_v49 = vpop.eup %855  ;;  %v356_v51 = vadd.f32 1.0, %v854_v48 }
  0xd2   : > { %v407_v31 = vsub.f32 1.0, %v406_v29  ;;  %v858_v50 = vpop.eup %857  ;;  %v358_v52 = vadd.f32 1.0, %v856_v49  ;;  %v535_v49 = vperm.slane %v1198_v40, 4 }
  0xd3   : > { %v1131_v53 = vadd.f32 1.0, %v858_v50  ;;  %859 = vrcp.f32 %v356_v51  ;;  %vm365_vm5 = vweird.f32 %v356_v51  ;;  %v369_v7 = vand.u32 2147483647, %v356_v51 }
  0xd4   : > { %v408_v33 = vmul.f32 %v852_v28, %v407_v31  ;;  %861 = vrcp.f32 %v358_v52  ;;  %vm395_vm7 = vweird.f32 %v358_v52  ;;  %v371_v10 = vand.u32 2147483648, %v356_v51 }
  0xd5   : > { %863 = vrcp.f32 %v1131_v53  ;;  %v399_v11 = vand.u32 2147483647, %v358_v52  ;;  %v401_v12 = vand.u32 2147483648, %v358_v52  ;;  %vm380_vm10 = vweird.f32 %v1131_v53 }
  0xd6   : > { %v409_v35 = vadd.f32 %v852_v28, %v408_v33  ;;  %v386_v20 = vand.u32 2147483648, %v1131_v53  ;;  %vm1172_vm13 = vcmp.eq.f32.partialorder %v369_v7, 8.507059e+37  ;;  %v384_v26 = vand.u32 2147483647, %v1131_v53 }
  0xd7   : > { %v372_v29 = vor.u32 1.1754944e-38, %v371_v10  ;;  %v402_v30 = vor.u32 1.1754944e-38, %v401_v12  ;;  %vm400_vm15 = vcmp.eq.f32.partialorder %v399_v11, 8.507059e+37 }
  0xd8   : > { %v413_v36 = vsel %vm412_vm3, %v852_v28, %v409_v35  ;;  %vm385_vm0 = vcmp.eq.f32.partialorder %v384_v26, 8.507059e+37  ;;  %vm549_vm3 = vcmask 1040384  }
  0xd9   : > { %v418_v38 = vsel %vm415_vm4, %v417_v34, %v413_v36  ;;  %v860_v54 = vpop.eup %859  ;;  %v387_v34 = vor.u32 1.1754944e-38, %v386_v20 }
  0xda   : > { %v1116_v39 = vmul.f32 %v418_v38, %v342_v24  ;;  %v1134_v55 = vpop.eup %861  ;;  %v361_v57 = vmul.f32 %v860_v54, %v356_v51  ;;  %vm366_vm6 = vweird.f32 %v860_v54 }
  0xdb   : > { %v1136_v56 = vpop.eup %863  ;;  %v391_v58 = vmul.f32 %v1134_v55, %v358_v52  ;;  %vm396_vm8 = vweird.f32 %v1134_v55  ;;  %vm1155_vm9 = vmor %vm365_vm5, %vm366_vm6 }
  0xdc   : > { %609 = vst [vmem:[#allocation2] sm:$0xff] %v1116_v39  ;;  %v376_v59 = vmul.f32 %v1136_v56, %v1131_v53  ;;  %v362_v62 = vsub.f32 1.0, %v361_v57  ;;  %vm381_vm11 = vweird.f32 %v1136_v56  ;;  %vm1163_vm12 = vmor %vm395_vm7, %vm396_vm8 }
  0xdd   : > { %v392_v63 = vsub.f32 1.0, %v391_v58  ;;  %vm1180_vm14 = vmor %vm380_vm10, %vm381_vm11 }
  0xde   : > { %v377_v3 = vsub.f32 1.0, %v376_v59  ;;  %v363_v5 = vmul.f32 %v860_v54, %v362_v62 }
  0xdf   : > { %v393_v6 = vmul.f32 %v1134_v55, %v392_v63 }
  0xe0   : > { %v378_v8 = vmul.f32 %v1136_v56, %v377_v3  ;;  %v364_v14 = vadd.f32 %v860_v54, %v363_v5 }
  0xe1   : > { %v394_v16 = vadd.f32 %v1134_v55, %v393_v6 }
  0xe2   : > { %v379_v25 = vadd.f32 %v1136_v56, %v378_v8  ;;  %v368_v32 = vsel %vm1155_vm9, %v860_v54, %v364_v14  ;;  %v552_v8 = vperm.slane %v1198_v40, 3 }
  0xe3   : > { %v398_v33 = vsel %vm1163_vm12, %v1134_v55, %v394_v16  ;;  %v373_v38 = vsel %vm1172_vm13, %v372_v29, %v368_v32  ;;  %v557_v55 = vperm.slane %v1198_v40, 7 }
  0xe4   : > { %v383_v36 = vsel %vm1180_vm14, %v1136_v56, %v379_v25  ;;  %v403_v42 = vsel %vm400_vm15, %v402_v30, %v398_v33  ;;  %v420_v48 = vmul.f32 %v373_v38, %v1120_v41 }
  0xe5   : > { %v388_v46 = vsel %vm385_vm0, %v387_v34, %v383_v36  ;;  %v422_v50 = vmul.f32 %v403_v42, %v1123_v43 }
  0xe6   : > { %v1206_v54 = vmul.f32 %v388_v46, %v1126_v44  ;;  %v1212_v41 = vmul.f32 %v535_v49, %v420_v48  ;;  %v847_v46 = vld [vmem:[%s1309_s3 + $0x8] ss:$0 sm:$0xff] }
  0xe7   : > { %v537_v59 = vmul.f32 %v535_v49, %v422_v50  ;;  %v263_v50 = vld [vmem:[#allocation2 + $0x8] sm:$0xff] }
  0xe8   : > { %v1216_v44 = vmul.f32 %v557_v55, %v1206_v54 }
 0x11c   : > { %v448_v60 = vpop.f32.mrf.mxu3 }
 0x11d   : > { %v1142_v61 = vadd.f32 %v1111_v22, %v448_v60 }
 0x11e   : > { %v443_v0 = vpop.f32.mrf.mxu1 }
 0x11f   : > { %v747_v1 = vmul.f32 -1.442695, %v1142_v61  ;;  %v1146_v2 = vadd.f32 %v1111_v22, %v443_v0  ;;  %v538_v0 = vperm.slane %v1198_v40, 5 }
 0x121   : > { %865 = vpow2.f32 %v747_v1  ;;  %v745_v4 = vmul.f32 -1.442695, %v1146_v2 }
 0x123   : > { %867 = vpow2.f32 %v745_v4 }
 0x124   : > { %v450_v9 = vpop.f32.mrf.mxu3 }
 0x125   : > { %v1153_v13 = vadd.f32 %v1111_v22, %v450_v9 }
 0x126   : > { %v445_v17 = vpop.f32.mrf.mxu1 }
 0x127   : > { %v866_v18 = vpop.eup %865  ;;  %v748_v21 = vmul.f32 -1.442695, %v1153_v13  ;;  %v1170_v23 = vadd.f32 %v1111_v22, %v445_v17 }
 0x128   : > { %v467_v27 = vadd.f32 1.0, %v866_v18 }
 0x129   : > { %v868_v28 = vpop.eup %867  ;;  %869 = vpow2.f32 %v748_v21  ;;  %v746_v22 = vmul.f32 -1.442695, %v1170_v23 }
 0x12a   : > { %871 = vrcp.f32 %v467_v27  ;;  %v465_v35 = vadd.f32 1.0, %v868_v28  ;;  %v510_v60 = vand.u32 2147483648, %v467_v27  ;;  %v508_v63 = vand.u32 2147483647, %v467_v27 }
 0x12b   : > { %873 = vpow2.f32 %v746_v22  ;;  %vm504_vm2 = vweird.f32 %v467_v27 }
 0x12c   : > { %875 = vrcp.f32 %v465_v35  ;;  %v478_v3 = vand.u32 2147483647, %v465_v35  ;;  %v480_v5 = vand.u32 2147483648, %v465_v35  ;;  %v511_v7 = vor.u32 1.1754944e-38, %v510_v60 }
 0x12d   : > { %vm509_vm6 = vcmp.eq.f32.partialorder %v508_v63, 8.507059e+37  ;;  %vm474_vm7 = vweird.f32 %v465_v35 }
 0x12e   : > { %vm479_vm8 = vcmp.eq.f32.partialorder %v478_v3, 8.507059e+37  ;;  %v481_v18 = vor.u32 1.1754944e-38, %v480_v5  ;;  %v591_v5 = vrot.slane %v263_v50, 7 }
 0x12f   : > { %v870_v45 = vpop.eup %869 }
 0x130   : > { %v872_v47 = vpop.eup %871  ;;  %v1203_v51 = vadd.f32 1.0, %v870_v45 }
 0x131   : > { %v874_v52 = vpop.eup %873  ;;  %v500_v53 = vmul.f32 %v872_v47, %v467_v27  ;;  %vm505_vm1 = vweird.f32 %v872_v47 }
 0x132   : > { %877 = vrcp.f32 %v1203_v51  ;;  %v876_v56 = vpop.eup %875  ;;  %v1210_v58 = vadd.f32 1.0, %v874_v52  ;;  %vm506_vm4 = vmor %vm504_vm2, %vm505_vm1  ;;  %v525_v15 = vand.u32 2147483648, %v1203_v51  ;;  %vm519_vm10 = vweird.f32 %v1203_v51 }
 0x133   : > { %v501_v57 = vsub.f32 1.0, %v500_v53  ;;  %v470_v43 = vmul.f32 %v876_v56, %v465_v35  ;;  %vm475_vm5 = vweird.f32 %v876_v56  ;;  %v523_v21 = vand.u32 2147483647, %v1203_v51 }
 0x134   : > { %879 = vrcp.f32 %v1210_v58  ;;  %vm476_vm9 = vmor %vm474_vm7, %vm475_vm5  ;;  %v526_v30 = vor.u32 1.1754944e-38, %v525_v15  ;;  %v495_v34 = vand.u32 2147483648, %v1210_v58  ;;  %vm489_vm15 = vweird.f32 %v1210_v58 }
 0x135   : > { %v502_v62 = vmul.f32 %v872_v47, %v501_v57  ;;  %v471_v1 = vsub.f32 1.0, %v470_v43  ;;  %vm524_vm13 = vcmp.eq.f32.partialorder %v523_v21, 8.507059e+37 }
 0x136   : > { %v496_v57 = vor.u32 1.1754944e-38, %v495_v34 }
 0x137   : > { %v503_v4 = vadd.f32 %v872_v47, %v502_v62  ;;  %v472_v9 = vmul.f32 %v876_v56, %v471_v1  ;;  %v580_v62 = vperm.slane %v1198_v40, 1 }
 0x138   : > { %v878_v6 = vpop.eup %877 }
 0x139   : > { %v507_v10 = vsel %vm506_vm4, %v872_v47, %v503_v4  ;;  %v515_v11 = vmul.f32 %v878_v6, %v1203_v51  ;;  %v473_v14 = vadd.f32 %v876_v56, %v472_v9  ;;  %vm520_vm11 = vweird.f32 %v878_v6 }
 0x13a   : > { %v512_v12 = vsel %vm509_vm6, %v511_v7, %v507_v10  ;;  %v880_v16 = vpop.eup %879  ;;  %vm521_vm12 = vmor %vm519_vm10, %vm520_vm11  ;;  %v585_v4 = vperm.slane %v1198_v40, 2  ;;  %v581_v10 = vmul.f32 %v580_v62, %v1114_v37 }
 0x13b   : > { %v531_v17 = vmul.f32 %v512_v12, %v1142_v61  ;;  %v516_v19 = vsub.f32 1.0, %v515_v11  ;;  %v477_v20 = vsel %vm476_vm9, %v876_v56, %v473_v14  ;;  %v485_v24 = vmul.f32 %v880_v16, %v1210_v58 }
 0x13c   : > { %v482_v27 = vsel %vm479_vm8, %v481_v18, %v477_v20  ;;  %v493_v61 = vand.u32 2147483647, %v1210_v58  ;;  %vm490_vm14 = vweird.f32 %v880_v16  ;;  %v586_v18 = vmul.f32 %v585_v4, %v263_v50 }
 0x13d   : > { %v540_v25 = vmul.f32 %v538_v0, %v531_v17  ;;  %v546_v26 = vrot.slane %v531_v17, 7  ;;  %v517_v28 = vmul.f32 %v878_v6, %v516_v19  ;;  %v529_v29 = vmul.f32 %v482_v27, %v1146_v2  ;;  %vm491_vm0 = vmor %vm489_vm15, %vm490_vm14 }
 0x13e   : > { %v486_v31 = vsub.f32 1.0, %v485_v24  ;;  %v559_v2 = vmul.f32 %v557_v55, %v1116_v39  ;;  %v575_v55 = vperm.slane %v1198_v40, 6  ;;  %vm494_vm1 = vcmp.eq.f32.partialorder %v493_v61, 8.507059e+37 }
 0x13f   : > { %v542_v22 = vadd.f32 %v540_v25, %v537_v59  ;;  %v551_v32 = vsel %vm549_vm3, 0.0, %v546_v26  ;;  %v518_v33 = vadd.f32 %v878_v6, %v517_v28  ;;  %v539_v36 = vmul.f32 %v538_v0, %v529_v29  ;;  %v848_v25 = vld [vmem:[%s1310_s4] ss:$0 sm:$0xff] }
 0x140   : > { %v554_v35 = vmul.f32 %v552_v8, %v551_v32  ;;  %v545_v38 = vrot.slane %v529_v29, 7  ;;  %v487_v42 = vmul.f32 %v880_v16, %v486_v31 }
 0x141   : > { %v522_v45 = vsel %vm521_vm12, %v878_v6, %v518_v33  ;;  %v541_v48 = vadd.f32 %v539_v36, %v1212_v41 }
 0x142   : > { %v556_v47 = vadd.f32 %v554_v35, %v542_v22  ;;  %v550_v49 = vsel %vm549_vm3, 0.0, %v545_v38  ;;  %v527_v52 = vsel %vm524_vm13, %v526_v30, %v522_v45  ;;  %v488_v56 = vadd.f32 %v880_v16, %v487_v42 }
 0x143   : > { %v553_v53 = vmul.f32 %v552_v8, %v550_v49  ;;  %v532_v51 = vmul.f32 %v527_v52, %v1153_v13  ;;  %v582_v8 = vmul.f32 %v580_v62, %v1206_v54 }
 0x144   : > { %v561_v39 = vadd.f32 %v559_v2, %v556_v47  ;;  %v492_v43 = vsel %vm491_vm0, %v880_v16, %v488_v56  ;;  %v593_v16 = vsel %vm549_vm3, 0.0, %v591_v5 }
 0x145   : > { %v555_v59 = vadd.f32 %v553_v53, %v541_v48  ;;  %v564_v60 = vmul.f32 %v847_v46, %v532_v51  ;;  %v570_v41 = vrot.slane %v532_v51, 7  ;;  %610 = vst [vmem:[#allocation2 + $0x8] sm:$0xff] %v532_v51  ;;  %v497_v63 = vsel %vm494_vm1, %v496_v57, %v492_v43 }
 0x146   : > { %v530_v1 = vmul.f32 %v497_v63, %v1170_v23  ;;  %v594_v23 = vperm.slane %v1198_v40, 0 }
 0x147   : > { %v560_v13 = vadd.f32 %v1216_v44, %v555_v59  ;;  %v566_v0 = vadd.f32 %v564_v60, %v561_v39  ;;  %v574_v58 = vsel %vm549_vm3, 0.0, %v570_v41 }
 0x148   : > { %v577_v3 = vmul.f32 %v575_v55, %v574_v58  ;;  %v563_v6 = vmul.f32 %v847_v46, %v530_v1  ;;  %v569_v7 = vrot.slane %v530_v1, 7  ;;  %v587_v15 = vmul.f32 %v585_v4, %v530_v1 }
 0x149   : > { %v595_v37 = vmul.f32 %v594_v23, %v593_v16 }
 0x14a   : > { %v579_v9 = vadd.f32 %v577_v3, %v566_v0  ;;  %v565_v11 = vadd.f32 %v563_v6, %v560_v13  ;;  %v573_v44 = vsel %vm549_vm3, 0.0, %v569_v7 }
 0x14b   : > { %v576_v12 = vmul.f32 %v575_v55, %v573_v44  ;;  %v596_v20 = vmul.f32 %v594_v23, %v573_v44 }
 0x14c   : > { %v584_v14 = vadd.f32 %v582_v8, %v579_v9 }
 0x14d   : > { %v578_v17 = vadd.f32 %v576_v12, %v565_v11 }
 0x14e   : > { %v589_v19 = vadd.f32 %v587_v15, %v584_v14 }
 0x14f   : > { %v583_v54 = vadd.f32 %v581_v10, %v578_v17 }
 0x150   : > { %v598_v24 = vadd.f32 %v596_v20, %v589_v19 }
 0x151   : > { %v588_v21 = vadd.f32 %v586_v18, %v583_v54 }
 0x152   : > { %v604_v27 = vadd.f32 %v848_v25, %v598_v24 }
 0x153   : > { %v597_v40 = vadd.f32 %v595_v37, %v588_v21 }
 0x155   : > { %v603_v26 = vadd.f32 %v848_v25, %v597_v40 }
 0x157   : > { %v762_v28 = vpack.c.bf16 %v604_v27, %v603_v26 }
 0x159   : > { %763 = vst [vmem:[%s242_s9] sm:$0xff] %v762_v28  }
 0x15a   : > { %908 = shalt.err (!%p905_p9)
}
 0x15b   : > { %s979_s12 = smov 4  }
 0x15c   : > { %772 = dma.vmem_to_hbm [thread:$0]  (%p1061_p3), %s627_s27, 128, %s629_s30, %s612_s8, %s978_s17, %s978_s17, %s979_s12  }
 0x15d PF: > { %p778_p10 = scmp.ge.s32.totalorder %s975_s25, 2  ;;  %s643_s14 = sand.u32 1, %s947_s18  }
 0x15e   : > { %s644_s9 = scalar_lea.sflag [#allocation4], %s643_s14 }
 0x15f   : > { %p775_p11 = pnand %p778_p10, %p1070_p8 }
 0x161   : > { %p776_p12 = pneg %p775_p11 }
 0x163   : > { %942 = dma.done.wait (%p776_p12), %s644_s9, 128  }
 0x164   : > { %944 = vsyncadd (%p776_p12), %s644_s9, 4294967168  ;;  %s18_s25 = sadd.s32 1, %s975_s25   ;;  %s1322_s18 = smov %s951_s19 }
 0x165   : > { %p15_p13 = scmp.ge.s32.totalorder %s18_s25, 10   ;;  %s1323_s19 = smov %s955_s20 }
 0x166   : > { %s1324_s20 = smov %s1079_s11  ;;  %s1325_s21 = smov %s967_s23 }
 0x167   : > { %s1326_s22 = smov %s971_s24  ;;  %s1327_s23 = smov %s1330_s28 }
 0x168   : > { %s1328_s24 = smov %s1334_s29  ;;  %17 = sbr.rel (!%p15_p13) target bundleno = 5 (0x5), region = 80 }
 0x16d   :  { %650 = vsyncpa [#allocation4], 1 }
 0x16e   :  { %652 = vsyncpa [#allocation4 + $0x1], 1 }

</bundles_post_ra>
